<compile_context>
chip_gen: v6e
topology: v6e:2x2x1
jax: 0.10.0
libtpu: 0.0.40
codegen_flags: <defaults>
</compile_context>

<pallas_src>
import functools

import jax
import jax.numpy as jnp
from jax.experimental import pallas as pl
from jax.experimental.pallas import tpu as pltpu


def _round_up(v, m):
    return ((v + m - 1) // m) * m


def _vmem_budget_bytes():
    """Generation-gated VMEM budget: ~48 MiB on 64-MiB v7x, ~96 MiB on v5e/v6e."""
    try:
        cap = int(pltpu.get_tpu_info().vmem_capacity_bytes)
    except Exception:  # conservative default if the query is unavailable
        cap = 64 * 1024 * 1024
    return min((cap * 3) // 4, 96 * 1024 * 1024)


def _pick_tile_h(H_out, W_out, KWC, C_out_pad, KH, dilation, budget):
    """Largest H_out tile whose double-buffered blocks fit the VMEM budget."""
    th = max(1, H_out)
    while th > 1:
        rows_out = th * W_out
        rows_in = (th + (KH - 1) * dilation) * W_out
        in_b = _round_up(rows_in, 16) * _round_up(KWC, 128) * 2      # bf16 input block
        out_b = _round_up(rows_out, 8) * C_out_pad * 4               # f32 output block
        w_b = KH * _round_up(KWC, 16) * C_out_pad * 2                # bf16 weights
        need = 2 * in_b + 2 * out_b + out_b + w_b + (2 << 20)        # + accumulator/slack
        if need <= budget and rows_out <= 8192:
            break
        th = max(1, th // 2)
    return th


def _conv_bn_relu_kernel(x_ref, w_ref, b_ref, o_ref, *, taps, rows_out):
    """Fused stride-1 conv + folded-BN bias + ReLU for one (image, H-tile).

    x_ref: (rows_in, KW*C_in)        bf16  W-im2col'd rows (incl. KH-1 halo rows)
    w_ref: (KH, KW*C_in, C_out_pad)  bf16  per-kh weight slab, BN scale folded in
    b_ref: (1, C_out_pad)            f32   folded BN bias
    o_ref: (rows_out, C_out_pad)           output rows = (TH, W_out) flattened
    """
    # KH chained matmuls, each contracting over K = KW*C_in (deep MXU contraction).
    acc = jnp.dot(x_ref[pl.ds(taps[0], rows_out), :], w_ref[0],
                  preferred_element_type=jnp.float32)
    for kh in range(1, len(taps)):              # static unroll over the KH taps
        acc = acc + jnp.dot(x_ref[pl.ds(taps[kh], rows_out), :], w_ref[kh],
                            preferred_element_type=jnp.float32)
    o_ref[...] = jnp.maximum(acc + b_ref[...], 0.0).astype(o_ref.dtype)


def _gemm_bn_relu_kernel(p_ref, w_ref, b_ref, o_ref):
    """Fallback epilogue-fused GEMM: (tm, K) @ (K, C_out_pad) + bias, ReLU."""
    acc = jnp.dot(p_ref[...], w_ref[...], preferred_element_type=jnp.float32)
    o_ref[...] = jnp.maximum(acc + b_ref[...], 0.0).astype(o_ref.dtype)


def basic_conv2d(x, weight, gamma, beta, running_mean, running_var, *,
                 stride=1, padding=0, dilation=1, groups=1, eps=1e-5,
                 data_format="NCHW", tile_h=None):
    """Conv2d(bias=False) + BatchNorm2d(eval mode) + ReLU."""
    if groups != 1:
        raise NotImplementedError("groups > 1 not supported")

    if data_format == "NCHW":
        N, C_in, H, W = x.shape
        x_nhwc = x.transpose(0, 2, 3, 1)
        # TODO(synk): run the surrounding model NHWC (data_format="NHWC") to drop
        # this transpose and the matching output transpose entirely.
    elif data_format == "NHWC":
        N, H, W, C_in = x.shape
        x_nhwc = x
    else:
        raise ValueError(f"unsupported data_format {data_format!r}")

    C_out, _, KH, KW = weight.shape
    H_out = (H + 2 * padding - dilation * (KH - 1) - 1) // stride + 1
    W_out = (W + 2 * padding - dilation * (KW - 1) - 1) // stride + 1

    # ---- fold eval-mode BatchNorm into a per-output-channel affine ----------
    inv_std = 1.0 / jnp.sqrt(running_var.astype(jnp.float32) + eps)
    scale = gamma.astype(jnp.float32) * inv_std                      # (C_out,)
    bias = beta.astype(jnp.float32) - running_mean.astype(jnp.float32) * scale
    w_fold = weight.astype(jnp.float32) * scale[:, None, None, None]

    C_out_pad = _round_up(C_out, 128)       # lane-dense stores / full MXU width
    bias_pad = jnp.pad(bias, (0, C_out_pad - C_out)).reshape(1, C_out_pad)
    compute_dtype = jnp.bfloat16            # MXU-native operands, f32 accumulate

    budget = _vmem_budget_bytes()

    if stride == 1:
        # ================= fast path: W-im2col + KH shifted matmuls ==========
        KWC = KW * C_in
        Hp = H + 2 * padding
        # padded NHWC input, cast once to bf16 before the (KW-fold) duplication
        xp = jnp.pad(x_nhwc.astype(compute_dtype),
                     ((0, 0), (padding, padding), (padding, padding), (0, 0)))

        # W-only im2col: (N, Hp, W_out, KW*C_in), feature order = (kw, c_in)
        cols = [xp[:, :, kw * dilation: kw * dilation + W_out, :] for kw in range(KW)]
        xw = jnp.stack(cols, axis=3).reshape(N, Hp, W_out, KWC)

        # H-tile size (generation-gated VMEM budget) and halo bookkeeping
        TH = tile_h if tile_h is not None else \
            _pick_tile_h(H_out, W_out, KWC, C_out_pad, KH, dilation, budget)
        TH = max(1, min(TH, H_out))
        n_t = (H_out + TH - 1) // TH
        H_out_pad = n_t * TH
        TH_in = TH + (KH - 1) * dilation
        Hp_need = H_out_pad + (KH - 1) * dilation
        if Hp_need > Hp:
            xw = jnp.pad(xw, ((0, 0), (0, Hp_need - Hp), (0, 0), (0, 0)))

        # Per-tile rows with the (KH-1)*dilation halo gathered wrapper-side so the
        # kernel only needs plain Blocked BlockSpecs (auto double-buffering).
        row_idx = jnp.arange(n_t)[:, None] * TH + jnp.arange(TH_in)[None, :]
        x_tiles = xw[:, row_idx]                      # (N, n_t, TH_in, W_out, KWC)
        rows_in = TH_in * W_out
        rows_out = TH * W_out
        x_tiles = x_tiles.reshape(N, n_t, rows_in, KWC)

        # (C_out, C_in, KH, KW) -> (KH, KW*C_in, C_out_pad), BN scale folded in
        w_stack = w_fold.transpose(2, 3, 1, 0).reshape(KH, KWC, C_out)
        w_stack = jnp.pad(w_stack, ((0, 0), (0, 0), (0, C_out_pad - C_out)))
        w_stack = w_stack.astype(compute_dtype)

        taps = tuple(kh * dilation * W_out for kh in range(KH))
        kernel = functools.partial(_conv_bn_relu_kernel, taps=taps, rows_out=rows_out)

        cost = pl.CostEstimate(
            flops=int(2 * N * H_out * W_out * KH * KW * C_in * C_out),
            transcendentals=0,
            bytes_accessed=int(x_tiles.size * 2 + w_stack.size * 2
                               + N * n_t * rows_out * C_out_pad * 4))

        out = pl.pallas_call(
            kernel,
            out_shape=jax.ShapeDtypeStruct((N, n_t, rows_out, C_out_pad), x.dtype),
            grid_spec=pltpu.PrefetchScalarGridSpec(
                num_scalar_prefetch=0,
                grid=(N, n_t),
                in_specs=[
                    pl.BlockSpec((None, None, rows_in, KWC), lambda n, t: (n, t, 0, 0)),
                    pl.BlockSpec((KH, KWC, C_out_pad), lambda n, t: (0, 0, 0)),
                    pl.BlockSpec((1, C_out_pad), lambda n, t: (0, 0)),
                ],
                out_specs=pl.BlockSpec((None, None, rows_out, C_out_pad),
                                       lambda n, t: (n, t, 0, 0)),
            ),
            compiler_params=pltpu.CompilerParams(
                dimension_semantics=("parallel", "parallel"),
                vmem_limit_bytes=int(budget)),
            cost_estimate=cost,
        )(x_tiles, w_stack, bias_pad)

        out = out.reshape(N, H_out_pad, W_out, C_out_pad)[:, :H_out, :, :C_out]
    else:
        # ================= generic path (stride > 1): im2col GEMM ============
        xp = jnp.pad(x_nhwc.astype(compute_dtype),
                     ((0, 0), (padding, padding), (padding, padding), (0, 0)))
        cols = []
        for kh in range(KH):
            for kw in range(KW):
                h0, w0 = kh * dilation, kw * dilation
                cols.append(xp[:, h0:h0 + (H_out - 1) * stride + 1:stride,
                               w0:w0 + (W_out - 1) * stride + 1:stride, :])
        Kdim = C_in * KH * KW
        patches = jnp.stack(cols, axis=3)            # (N, H_out, W_out, KH*KW, C_in)
        patches = patches.reshape(N * H_out * W_out, Kdim)

        # tile M so that (patch block x2) + weights + (out block x2) fit the budget
        tm = 512
        while tm > 32:
            need = (2 * tm * _round_up(Kdim, 128) * 2
                    + 2 * _round_up(Kdim, 16) * C_out_pad * 2
                    + 2 * tm * C_out_pad * 4 + (2 << 20))
            if need <= budget:
                break
            tm //= 2

        M = N * H_out * W_out
        M_pad = _round_up(M, tm)
        if M_pad != M:
            patches = jnp.pad(patches, ((0, M_pad - M), (0, 0)))

        w_mat = w_fold.transpose(2, 3, 1, 0).reshape(Kdim, C_out)   # (kh,kw,c) order
        w_mat = jnp.pad(w_mat, ((0, 0), (0, C_out_pad - C_out))).astype(compute_dtype)

        out = pl.pallas_call(
            _gemm_bn_relu_kernel,
            out_shape=jax.ShapeDtypeStruct((M_pad, C_out_pad), x.dtype),
            grid_spec=pltpu.PrefetchScalarGridSpec(
                num_scalar_prefetch=0,
                grid=(M_pad // tm,),
                in_specs=[
                    pl.BlockSpec((tm, Kdim), lambda i: (i, 0)),
                    pl.BlockSpec((Kdim, C_out_pad), lambda i: (0, 0)),
                    pl.BlockSpec((1, C_out_pad), lambda i: (0, 0)),
                ],
                out_specs=pl.BlockSpec((tm, C_out_pad), lambda i: (i, 0)),
            ),
            compiler_params=pltpu.CompilerParams(
                dimension_semantics=("parallel",),
                vmem_limit_bytes=int(budget)),
        )(patches, w_mat, bias_pad)

        out = out[:M, :C_out].reshape(N, H_out, W_out, C_out)

    if data_format == "NCHW":
        out = out.transpose(0, 3, 1, 2)
    return out


if __name__ == "__main__":
    def _reference(x, weight, gamma, beta, rm, rv, stride, padding, dilation, eps=1e-5):
        conv = jax.lax.conv_general_dilated(
            x, weight, window_strides=(stride, stride),
            padding=((padding, padding), (padding, padding)),
            rhs_dilation=(dilation, dilation),
            dimension_numbers=("NCHW", "OIHW", "NCHW"))
        inv_std = 1.0 / jnp.sqrt(rv + eps)
        y = (conv - rm[None, :, None, None]) * (gamma * inv_std)[None, :, None, None] \
            + beta[None, :, None, None]
        return jnp.maximum(y, 0.0)

    def _case(key, N, C_in, H, W, C_out, K, stride, padding, dilation=1, tile_h=None):
        kx, kw, kg, kb, km, kv = jax.random.split(key, 6)
        x = jax.random.normal(kx, (N, C_in, H, W), jnp.float32)
        weight = jax.random.normal(kw, (C_out, C_in, K, K), jnp.float32) * 0.1
        gamma = 1.0 + 0.1 * jax.random.normal(kg, (C_out,), jnp.float32)
        beta = 0.1 * jax.random.normal(kb, (C_out,), jnp.float32)
        rm = 0.1 * jax.random.normal(km, (C_out,), jnp.float32)
        rv = 0.9 + 0.1 * jnp.abs(jax.random.normal(kv, (C_out,), jnp.float32))

        y = basic_conv2d(x, weight, gamma, beta, rm, rv, stride=stride,
                         padding=padding, dilation=dilation, tile_h=tile_h)
        y = jax.block_until_ready(y)

        ref = _reference(x, weight, gamma, beta, rm, rv, stride, padding, dilation)
        assert y.shape == ref.shape, (y.shape, ref.shape)
        max_err = jnp.max(jnp.abs(y - ref))
        # bf16 GEMM operands (f32 accumulation) vs. the f32 reference.
        assert jnp.allclose(y, ref, atol=5e-2, rtol=5e-2), \
            f"mismatch vs reference (max abs err {max_err})"

    key = jax.random.PRNGKey(0)
    k0, k1, k2 = jax.random.split(key, 3)
    # BasicConv2d(4, 8, kernel_size=3, stride=1, padding=1) on (2, 4, 16, 16).
    _case(k0, N=2, C_in=4, H=16, W=16, C_out=8, K=3, stride=1, padding=1)
    # Multi-H-tile fast path (exercises the halo row gather), forced tile_h.
    _case(k1, N=1, C_in=8, H=32, W=16, C_out=16, K=3, stride=1, padding=1, tile_h=8)
    # stride=2 fallback (im2col GEMM) path.
    _case(k2, N=2, C_in=4, H=16, W=16, C_out=8, K=3, stride=2, padding=1)

    print("KERNEL_OK")
</pallas_src>

<mosaic_0001>
module attributes {stable_mosaic.version = 11 : i64} {
  func.func @_conv_bn_relu_kernel(%arg0: i32, %arg1: i32, %arg2: memref<1x1x288x12xbf16, #tpu.memory_space<vmem>>, %arg3: memref<3x12x128xbf16, #tpu.memory_space<vmem>>, %arg4: memref<1x128xf32, #tpu.memory_space<vmem>>, %arg5: memref<1x1x256x128xf32, #tpu.memory_space<vmem>>) attributes {dimension_semantics = [#tpu.dimension_semantics<parallel>, #tpu.dimension_semantics<parallel>], iteration_bounds = array<i64: 2, 1>, scalar_prefetch = 0 : i64, scratch_operands = 0 : i64, tpu.core_type = #tpu.core_type<tc>, window_params = [{transform_indices = @transform_0, window_bounds = array<i64: 1, 1, 288, 12>}, {pipeline_mode = #tpu.pipeline_mode<synchronous>, transform_indices = @transform_1, window_bounds = array<i64: 3, 12, 128>}, {pipeline_mode = #tpu.pipeline_mode<synchronous>, transform_indices = @transform_2, window_bounds = array<i64: 1, 128>}, {transform_indices = @transform_3, window_bounds = array<i64: 1, 1, 256, 128>}]} {
    %c0 = arith.constant 0 : index
    %c0_0 = arith.constant 0 : index
    %c0_1 = arith.constant 0 : index
    %c0_2 = arith.constant 0 : index
    %0 = vector.load %arg2[%c0, %c0_0, %c0_1, %c0_2] : memref<1x1x288x12xbf16, #tpu.memory_space<vmem>>, vector<1x1x256x12xbf16>
    %1 = vector.shape_cast %0 : vector<1x1x256x12xbf16> to vector<256x12xbf16>
    %c0_3 = arith.constant 0 : index
    %c0_4 = arith.constant 0 : index
    %c0_5 = arith.constant 0 : index
    %2 = vector.load %arg3[%c0_3, %c0_4, %c0_5] : memref<3x12x128xbf16, #tpu.memory_space<vmem>>, vector<1x12x128xbf16>
    %3 = vector.shape_cast %2 : vector<1x12x128xbf16> to vector<12x128xbf16>
    %cst = arith.constant dense<0.000000e+00> : vector<256x128xf32>
    %4 = tpu.matmul %1, %3, %cst {dimension_numbers = #tpu.dot_dimension_numbers<[1], [0], [0], [1], [0, 0, 1, 1], [], []>} : vector<256x12xbf16>, vector<12x128xbf16>, vector<256x128xf32> -> vector<256x128xf32>
    %c0_6 = arith.constant 0 : index
    %c0_7 = arith.constant 0 : index
    %c16 = arith.constant 16 : index
    %c0_8 = arith.constant 0 : index
    %5 = vector.load %arg2[%c0_6, %c0_7, %c16, %c0_8] : memref<1x1x288x12xbf16, #tpu.memory_space<vmem>>, vector<1x1x256x12xbf16>
    %6 = vector.shape_cast %5 : vector<1x1x256x12xbf16> to vector<256x12xbf16>
    %c1 = arith.constant 1 : index
    %c0_9 = arith.constant 0 : index
    %c0_10 = arith.constant 0 : index
    %7 = vector.load %arg3[%c1, %c0_9, %c0_10] : memref<3x12x128xbf16, #tpu.memory_space<vmem>>, vector<1x12x128xbf16>
    %8 = vector.shape_cast %7 : vector<1x12x128xbf16> to vector<12x128xbf16>
    %cst_11 = arith.constant dense<0.000000e+00> : vector<256x128xf32>
    %9 = tpu.matmul %6, %8, %cst_11 {dimension_numbers = #tpu.dot_dimension_numbers<[1], [0], [0], [1], [0, 0, 1, 1], [], []>} : vector<256x12xbf16>, vector<12x128xbf16>, vector<256x128xf32> -> vector<256x128xf32>
    %10 = arith.addf %4, %9 : vector<256x128xf32>
    %c0_12 = arith.constant 0 : index
    %c0_13 = arith.constant 0 : index
    %c32 = arith.constant 32 : index
    %c0_14 = arith.constant 0 : index
    %11 = vector.load %arg2[%c0_12, %c0_13, %c32, %c0_14] : memref<1x1x288x12xbf16, #tpu.memory_space<vmem>>, vector<1x1x256x12xbf16>
    %12 = vector.shape_cast %11 : vector<1x1x256x12xbf16> to vector<256x12xbf16>
    %c2 = arith.constant 2 : index
    %c0_15 = arith.constant 0 : index
    %c0_16 = arith.constant 0 : index
    %13 = vector.load %arg3[%c2, %c0_15, %c0_16] : memref<3x12x128xbf16, #tpu.memory_space<vmem>>, vector<1x12x128xbf16>
    %14 = vector.shape_cast %13 : vector<1x12x128xbf16> to vector<12x128xbf16>
    %cst_17 = arith.constant dense<0.000000e+00> : vector<256x128xf32>
    %15 = tpu.matmul %12, %14, %cst_17 {dimension_numbers = #tpu.dot_dimension_numbers<[1], [0], [0], [1], [0, 0, 1, 1], [], []>} : vector<256x12xbf16>, vector<12x128xbf16>, vector<256x128xf32> -> vector<256x128xf32>
    %16 = arith.addf %10, %15 : vector<256x128xf32>
    %c0_18 = arith.constant 0 : index
    %c0_19 = arith.constant 0 : index
    %17 = vector.load %arg4[%c0_18, %c0_19] : memref<1x128xf32, #tpu.memory_space<vmem>>, vector<1x128xf32>
    %18 = vector.broadcast %17 : vector<1x128xf32> to vector<256x128xf32>
    %19 = arith.addf %16, %18 : vector<256x128xf32>
    %cst_20 = arith.constant 0.000000e+00 : f32
    %20 = vector.broadcast %cst_20 : f32 to vector<256x128xf32>
    %21 = arith.maximumf %19, %20 : vector<256x128xf32>
    %c0_21 = arith.constant 0 : index
    %c0_22 = arith.constant 0 : index
    %c0_23 = arith.constant 0 : index
    %c0_24 = arith.constant 0 : index
    %22 = vector.load %arg5[%c0_21, %c0_22, %c0_23, %c0_24] : memref<1x1x256x128xf32, #tpu.memory_space<vmem>>, vector<1x1x256x128xf32>
    %23 = vector.shape_cast %22 : vector<1x1x256x128xf32> to vector<256x128xf32>
    %24 = vector.shape_cast %21 : vector<256x128xf32> to vector<1x1x256x128xf32>
    tpu.vector_store %arg5[%c0_21, %c0_22, %c0_23, %c0_24], %24 {strides = array<i32>} : memref<1x1x256x128xf32, #tpu.memory_space<vmem>>, vector<1x1x256x128xf32>,
    return
  }
  func.func @transform_0(%arg0: i32, %arg1: i32) -> (i32, i32, i32, i32) {
    %c0_i32 = arith.constant 0 : i32
    %c0_i32_0 = arith.constant 0 : i32
    %c0_i32_1 = arith.constant 0 : i32
    return %arg0, %arg1, %c0_i32, %c0_i32_0 : i32, i32, i32, i32
  }
  func.func @transform_1(%arg0: i32, %arg1: i32) -> (i32, i32, i32) {
    %c0_i32 = arith.constant 0 : i32
    %c0_i32_0 = arith.constant 0 : i32
    %c0_i32_1 = arith.constant 0 : i32
    %c0_i32_2 = arith.constant 0 : i32
    return %c0_i32, %c0_i32_0, %c0_i32_1 : i32, i32, i32
  }
  func.func @transform_2(%arg0: i32, %arg1: i32) -> (i32, i32) {
    %c0_i32 = arith.constant 0 : i32
    %c0_i32_0 = arith.constant 0 : i32
    %c0_i32_1 = arith.constant 0 : i32
    return %c0_i32, %c0_i32_0 : i32, i32
  }
  func.func @transform_3(%arg0: i32, %arg1: i32) -> (i32, i32, i32, i32) {
    %c0_i32 = arith.constant 0 : i32
    %c0_i32_0 = arith.constant 0 : i32
    %c0_i32_1 = arith.constant 0 : i32
    return %arg0, %arg1, %c0_i32, %c0_i32_0 : i32, i32, i32, i32
  }
}

</mosaic_0001>

<bundles_post_ra>
// kernel: tpu_custom_call.1
= control target key start
LH: loop header
LB: loop body
LE: loop exit
PB: predicated region body
PF: predicated region fallthrough
CT: control target
= control target key end

     0   :  { %8 = vsyncpa [#allocation3], 0  ;;  %s2106_s0 = inlined_call_operand.vmem [shape: bf16[2,1,288,12], index: 0, kind: input, shape index: {}]   ;;  %s2107_s1 = inlined_call_operand.vmem [shape: bf16[3,12,128], index: 1, kind: input, shape index: {}]   ;;  %s2108_s2 = inlined_call_operand.vmem [shape: f32[1,128], index: 2, kind: input, shape index: {}]   ;;  %s2109_s3 = inlined_call_operand.hbm [shape: f32[2,1,256,128], index: 3, kind: output, shape index: {}]  }
   0x1   :  { %10 = vsyncpa [#allocation3 + $0x1], 0  ;;  %s1734_s12 = smov 0   ;;  %s1736_s13 = smov 0  }
   0x2   :  { %s1738_s14 = smov 0   ;;  %s1740_s15 = smov 0  }
   0x3   :  { %s1742_s16 = smov 0   ;;  %s1744_s17 = smov 0  }
   0x4 LB: > { %s1278_s18 = sadd.s32 4294967295, %s1709_s17   ;;  %s1279_s19 = sadd.s32 4294967294, %s1709_s17   ;;  %s1709_s17 = sphi %s1744_s17, %s16_s17   ;;  %s1705_s16 = sphi %s1742_s16, %s2116_s16   ;;  %s1701_s15 = sphi %s1740_s15, %s2115_s15   ;;  %s1697_s14 = sphi %s1738_s14, %s2114_s14   ;;  %s1693_s13 = sphi %s1736_s13, %s2113_s13   ;;  %s1689_s12 = sphi %s1734_s12, %s2112_s12  }
   0x5   : > { %s28_s20 = sadd.s32 1, %s1705_s16  ;;  %s107_s21 = sadd.s32 1, %s1697_s14 }
   0x6   : > { %p30_p0 = scmp.ge.s32.totalorder %s28_s20, 2  ;;  %p117_p1 = scmp.ne.s32.totalorder %s1697_s14, %s1693_s13 }
   0x7   : > { %p118_p2 = scmp.eq.s32.totalorder %s1278_s18, 1  ;;  %p123_p3 = scmp.ne.s32.totalorder %s1693_s13, %s1689_s12 }
   0x8   : > { %s2118_s20 = smov (%p30_p0, %s28_s20), 0  ;;  %p124_p5 = scmp.eq.s32.totalorder %s1279_s19, 1 }
   0x9   : > { %p1774_p4 = por %p118_p2, %p117_p1  ;;  %s102_s23 = ssub.s32 %s1705_s16, %s2118_s20 }
   0xa   : > { %p1282_p6 = scmp.ge.s32.totalorder %s1709_s17, 1  ;;  %p105_p7 = scmp.eq.s32.totalorder %s102_s23, 0 }
   0xb   : > { %p1781_p8 = por %p124_p5, %p123_p3  ;;  %p160_p9 = scmp.lt.s32.totalorder %s1709_s17, 3 }
   0xc   : > { %s1787_s25 = scalar_select %p105_p7, %s1697_s14, %s107_s21  }
   0xd   : > { %p161_p10 = pnand %p1282_p6, %p160_p9 }
   0xe   : > { %p188_p11 = scmp.lt.s32.totalorder (!%p161_p10), %s1701_s15, 1  ;;  %s185_s10 = sand.u32 (!%p161_p10), 1, %s1693_s13  }
   0xf   : > { %164 = sbr.rel (%p161_p10) target bundleno = 337 (0x151), region = 32  ;;  %s1283_s19 = sshll.u32 (!%p161_p10), %s185_s10, 8 }
  0x10   : > { %s1961_s21 = scalar_lea.vmem (!%p161_p10), [#allocation2], %s1283_s19  ;;  %s1379_s23 = sshll.u32 (!%p161_p10), %s1701_s15, 12 }
  0x11   : > { %s1196_s26 = sshll.u32 (!%p161_p10), %s1961_s21, 4  ;;  %s2053_s29 = scalar_lea.hbm (!%p161_p10), %s2109_s3, %s1379_s23  ;;  %s2055_s26 = int_to_ptr.vmem [resolvable:$true] %s1196_s26 }
  0x12   : > { %s1711_s4 = smov (!%p161_p10), [#allocation2]  }
  0x13   : > { %s1637_s5 = sshll.u32 (!%p161_p10), %s1711_s4, 4  ;;  %s1638_s5 = int_to_ptr.vmem [resolvable:$false] %s1637_s5 }
  0x14   : > { %v1597_v0 = vld [vmem:[%s2107_s1 + $0x8] sm:$0x3f]   ;;  %vm371_vm0 = vcmask 1045504   ;;  %v1600_v2 = vld [vmem:[%s2107_s1] sm:$0x3f]   ;;  %s189_s30 = scalar_select %p188_p11, %s1701_s15, 1 }
  0x15   : > { %1536 = vmatprep.subr.msk.bf16.mxu1 %vm371_vm0, %v1597_v0  ;;  %1535 = vmatprep.subr.msk.bf16.mxu0 %vm371_vm0, %v1597_v0  ;;  %v373_v1 = vsel %vm371_vm0, %v1597_v0, 0  ;;  %v1603_v3 = vld [vmem:[%s2107_s1 + $0x10] sm:$0x3f]   ;;  %vm322_vm1 = vcmask 97280   ;;  %v550_v9 = vsel %vm371_vm0, %v1600_v2, 0  ;;  %s2061_s15 = scalar_lea.sflag [#allocation3], %s185_s10  ;;  %p1640_p1 = scmp.lt.s32.totalorder %s2055_s26, %s1638_s5 }
  0x16   : > { %1534 = vmatpush3.bf16.msra.mxu1 %v373_v1  ;;  %1432 = vmatpush3.bf16.msra.mxu0 %v373_v1  ;;  %s1539_s6 = smul.u32 144, %s189_s30  ;;  %v882_v7 = vsel %vm371_vm0, %v1603_v3, 0  ;;  %s1633_s30 = scalar_lea.vmem %s2055_s26, 4096 }
  0x17   : > { %1537 = vmatprep.subr.msk.bf16.mxu1 %vm371_vm0, %v1600_v2  ;;  %1538 = vmatprep.subr.msk.bf16.mxu0 %vm371_vm0, %v1603_v3  ;;  %p1634_p12 = scmp.ne.s32.totalorder %s2055_s26, %s1633_s30 }
  0x18   : > { %s1808_s9 = scalar_lea.vmem %s2106_s0, %s1539_s6  ;;  %s1639_s6 = scalar_lea.vmem %s1638_s5, 8192 }
  0x19   : > { %v1598_v4 = vld [vmem:[%s1808_s9 + $0x8] sm:$0xff]   ;;  %v1601_v6 = vld [vmem:[%s1808_s9 + $0x10] sm:$0xff]   ;;  %v1604_v10 = vld [vmem:[%s1808_s9 + $0x18] sm:$0xff]   ;;  %p1635_p13 = pnand %p1634_p12, %p1774_p4  ;;  %p1641_p2 = scmp.lt.s32.totalorder %s1639_s6, %s1633_s30 }
  0x1a   : > { %v1812_v5 = vld [vmem:[%s1808_s9 + $0x48] sm:$0xff]   ;;  %1433 = vmatprep.mubr.msk.bf16.mxu0 %vm322_vm1, %v1598_v4  ;;  %v1820_v8 = vld [vmem:[%s1808_s9 + $0x50] sm:$0xff]   ;;  %v1605_v11 = vld [vmem:[%s1808_s9 + $0x58] sm:$0xff]  }
  0x1b   : > { %1449 = vmatprep.mubr.msk.bf16.mxu1 %vm322_vm1, %v1812_v5  ;;  %1434 = vmatmul.mubr.msk.bf16.vlgmr.msra.gmra.mxu0 %vm322_vm1, %v1601_v6  ;;  %v1606_v12 = vld [vmem:[%s1808_s9 + $0x20] sm:$0xff]   ;;  %v1608_v14 = vld [vmem:[%s1808_s9 + $0x28] sm:$0xff]   ;;  %v1610_v16 = vld [vmem:[%s1808_s9 + $0x30] sm:$0xff]   ;;  %p1636_p0 = pneg %p1635_p13  ;;  %p1642_p3 = por %p1641_p2, %p1640_p1 }
  0x1c   : > { %1450 = vmatmul.mubr.msk.bf16.vlgmr.msra.gmra.mxu1 %vm322_vm1, %v1820_v8  ;;  %1500 = vmatpush3.bf16.msra.mxu0 %v882_v7  ;;  %v1607_v13 = vld [vmem:[%s1808_s9 + $0x60] sm:$0xff]   ;;  %v1609_v15 = vld [vmem:[%s1808_s9 + $0x68] sm:$0xff]   ;;  %v1611_v17 = vld [vmem:[%s1808_s9 + $0x70] sm:$0xff]  }
  0x1d   : > { %1466 = vmatpush3.bf16.msra.mxu1 %v550_v9  ;;  %1437 = vmatprep.mubr.msk.bf16.mxu0 %vm322_vm1, %v1604_v10  ;;  %v1612_v18 = vld [vmem:[%s1808_s9 + $0x38] sm:$0xff]   ;;  %v1614_v20 = vld [vmem:[%s1808_s9 + $0x40] sm:$0xff]   ;;  %v1617_v22 = vld [vmem:[%s1808_s9 + $0x10] sm:$0xff]   ;;  %p1643_p5 = pnand %p1642_p3, %p1636_p0 }
  0x1e   : > { %1453 = vmatprep.mubr.msk.bf16.mxu1 %vm322_vm1, %v1605_v11  ;;  %v1613_v19 = vld [vmem:[%s1808_s9 + $0x78] sm:$0xff]   ;;  %v1615_v21 = vld [vmem:[%s1808_s9 + $0x80] sm:$0xff]   ;;  %v1620_v26 = vld [vmem:[%s1808_s9 + $0x28] sm:$0xff]  }
  0x1f   : > { %v1616_v23 = vld [vmem:[%s1808_s9] sm:$0xff]   ;;  %v1618_v24 = vld [vmem:[%s1808_s9 + $0x18] sm:$0xff]   ;;  %v1621_v27 = vld [vmem:[%s1808_s9 + $0x30] sm:$0xff]  }
  0x20   : > { %v1619_v25 = vld [vmem:[%s1808_s9 + $0x20] sm:$0xff]   ;;  %v1622_v28 = vld [vmem:[%s1808_s9 + $0x38] sm:$0xff]   ;;  %v1624_v30 = vld [vmem:[%s1808_s9 + $0x48] sm:$0xff]  }
  0x21   : > { %v1623_v29 = vld [vmem:[%s1808_s9 + $0x40] sm:$0xff]   ;;  %v1625_v31 = vld [vmem:[%s1808_s9 + $0x50] sm:$0xff]   ;;  %v1626_v32 = vld [vmem:[%s1808_s9 + $0x58] sm:$0xff]  }
  0x22   : > { %v1627_v33 = vld [vmem:[%s1808_s9 + $0x60] sm:$0xff]   ;;  %v1628_v34 = vld [vmem:[%s1808_s9 + $0x68] sm:$0xff]   ;;  %v1629_v35 = vld [vmem:[%s1808_s9 + $0x70] sm:$0xff]  }
  0x23   : > { %1438 = vmatmul.mubr.msk.bf16.gmra.mxu0 %vm322_vm1, %v1606_v12  ;;  %v1630_v36 = vld [vmem:[%s1808_s9 + $0x78] sm:$0xff]   ;;  %v1631_v37 = vld [vmem:[%s1808_s9 + $0x80] sm:$0xff]   ;;  %v1632_v38 = vld [vmem:[%s1808_s9 + $0x88] sm:$0xff]  }
  0x24   : > { %1454 = vmatmul.mubr.msk.bf16.gmra.mxu1 %vm322_vm1, %v1607_v13  ;;  %1441 = vmatprep.mubr.msk.bf16.mxu0 %vm322_vm1, %v1608_v14 }
  0x25   : > { %1457 = vmatprep.mubr.msk.bf16.mxu1 %vm322_vm1, %v1609_v15 }
  0x2b   : > { %1442 = vmatmul.mubr.msk.bf16.gmra.mxu0 %vm322_vm1, %v1610_v16 }
  0x2c   : > { %1458 = vmatmul.mubr.msk.bf16.gmra.mxu1 %vm322_vm1, %v1611_v17  ;;  %1445 = vmatprep.mubr.msk.bf16.mxu0 %vm322_vm1, %v1612_v18 }
  0x2d   : > { %1461 = vmatprep.mubr.msk.bf16.mxu1 %vm322_vm1, %v1613_v19 }
  0x33   : > { %1446 = vmatmul.mubr.msk.bf16.gmra.mxu0 %vm322_vm1, %v1614_v20 }
  0x34   : > { %1462 = vmatmul.mubr.msk.bf16.gmra.mxu1 %vm322_vm1, %v1615_v21  ;;  %1501 = vmatprep.mubr.msk.bf16.mxu0 %vm322_vm1, %v1617_v22 }
  0x35   : > { %1467 = vmatprep.mubr.msk.bf16.mxu1 %vm322_vm1, %v1616_v23 }
  0x3b   : > { %1502 = vmatmul.mubr.msk.bf16.vlgmr.msra.gmra.mxu0 %vm322_vm1, %v1618_v24 }
  0x3c   : > { %1468 = vmatmul.mubr.msk.bf16.vlgmr.msra.gmra.mxu1 %vm322_vm1, %v1598_v4  ;;  %1505 = vmatprep.mubr.msk.bf16.mxu0 %vm322_vm1, %v1619_v25 }
  0x3d   : > { %1471 = vmatprep.mubr.msk.bf16.mxu1 %vm322_vm1, %v1601_v6 }
  0x43   : > { %1506 = vmatmul.mubr.msk.bf16.gmra.mxu0 %vm322_vm1, %v1620_v26 }
  0x44   : > { %1472 = vmatmul.mubr.msk.bf16.gmra.mxu1 %vm322_vm1, %v1604_v10  ;;  %1509 = vmatprep.mubr.msk.bf16.mxu0 %vm322_vm1, %v1621_v27 }
  0x45   : > { %1475 = vmatprep.mubr.msk.bf16.mxu1 %vm322_vm1, %v1606_v12 }
  0x4b   : > { %1510 = vmatmul.mubr.msk.bf16.gmra.mxu0 %vm322_vm1, %v1622_v28 }
  0x4c   : > { %1476 = vmatmul.mubr.msk.bf16.gmra.mxu1 %vm322_vm1, %v1608_v14  ;;  %1513 = vmatprep.mubr.msk.bf16.mxu0 %vm322_vm1, %v1623_v29 }
  0x4d   : > { %1479 = vmatprep.mubr.msk.bf16.mxu1 %vm322_vm1, %v1610_v16 }
  0x53   : > { %1514 = vmatmul.mubr.msk.bf16.gmra.mxu0 %vm322_vm1, %v1624_v30 }
  0x54   : > { %1480 = vmatmul.mubr.msk.bf16.gmra.mxu1 %vm322_vm1, %v1612_v18  ;;  %1517 = vmatprep.mubr.msk.bf16.mxu0 %vm322_vm1, %v1625_v31 }
  0x55   : > { %1483 = vmatprep.mubr.msk.bf16.mxu1 %vm322_vm1, %v1614_v20 }
  0x5b   : > { %1518 = vmatmul.mubr.msk.bf16.gmra.mxu0 %vm322_vm1, %v1626_v32 }
  0x5c   : > { %1484 = vmatmul.mubr.msk.bf16.gmra.mxu1 %vm322_vm1, %v1812_v5  ;;  %1521 = vmatprep.mubr.msk.bf16.mxu0 %vm322_vm1, %v1627_v33 }
  0x5d   : > { %1487 = vmatprep.mubr.msk.bf16.mxu1 %vm322_vm1, %v1820_v8 }
  0x63   : > { %1522 = vmatmul.mubr.msk.bf16.gmra.mxu0 %vm322_vm1, %v1628_v34 }
  0x64   : > { %1488 = vmatmul.mubr.msk.bf16.gmra.mxu1 %vm322_vm1, %v1605_v11  ;;  %1525 = vmatprep.mubr.msk.bf16.mxu0 %vm322_vm1, %v1629_v35  ;;  %v1955_v11 = vld [vmem:[%s2108_s2] ss:$0 sm:$0xff] }
  0x65   : > { %1491 = vmatprep.mubr.msk.bf16.mxu1 %vm322_vm1, %v1607_v13 }
  0x6b   : > { %1526 = vmatmul.mubr.msk.bf16.gmra.mxu0 %vm322_vm1, %v1630_v36 }
  0x6c   : > { %1492 = vmatmul.mubr.msk.bf16.gmra.mxu1 %vm322_vm1, %v1609_v15  ;;  %1529 = vmatprep.mubr.msk.bf16.mxu0 %vm322_vm1, %v1631_v37 }
  0x6d   : > { %1495 = vmatprep.mubr.msk.bf16.mxu1 %vm322_vm1, %v1611_v17 }
  0x73   : > { %1530 = vmatmul.mubr.msk.bf16.gmra.mxu0 %vm322_vm1, %v1632_v38 }
  0x74   : > { %1496 = vmatmul.mubr.msk.bf16.gmra.mxu1 %vm322_vm1, %v1613_v19 }
  0xdb   : > { %v1435_v39 = vpop.f32.mrf.mxu0 }
  0xdc   : > { %v1901_v40 = vpop.f32.mrf.mxu1 }
  0xdd   : > { %v409_v41 = vpop.f32.mrf.mxu0 }
  0xde   : > { %v1903_v42 = vpop.f32.mrf.mxu1 }
  0xdf   : > { %v1436_v43 = vpop.f32.mrf.mxu0 }
  0xe0   : > { %v1905_v44 = vpop.f32.mrf.mxu1 }
  0xe1   : > { %v412_v45 = vpop.f32.mrf.mxu0 }
  0xe2   : > { %v1907_v46 = vpop.f32.mrf.mxu1 }
  0xe3   : > { %v1439_v47 = vpop.f32.mrf.mxu0 }
  0xe4   : > { %v1909_v48 = vpop.f32.mrf.mxu1 }
  0xe5   : > { %v425_v49 = vpop.f32.mrf.mxu0 }
  0xe6   : > { %v1911_v50 = vpop.f32.mrf.mxu1 }
  0xe7   : > { %v1440_v51 = vpop.f32.mrf.mxu0 }
  0xe8   : > { %v1913_v52 = vpop.f32.mrf.mxu1 }
  0xe9   : > { %v1915_v53 = vpop.f32.mrf.mxu0 }
  0xea   : > { %v1917_v54 = vpop.f32.mrf.mxu1 }
  0xeb   : > { %v1919_v55 = vpop.f32.mrf.mxu0 }
  0xec   : > { %v1921_v56 = vpop.f32.mrf.mxu1 }
  0xed   : > { %v1923_v57 = vpop.f32.mrf.mxu0 }
  0xee   : > { %v1925_v58 = vpop.f32.mrf.mxu1 }
  0xef   : > { %v1927_v59 = vpop.f32.mrf.mxu0 }
  0xf0   : > { %v1929_v60 = vpop.f32.mrf.mxu1 }
  0xf1   : > { %v1931_v61 = vpop.f32.mrf.mxu0 }
  0xf2   : > { %v1933_v62 = vpop.f32.mrf.mxu1 }
  0xf3   : > { %v1935_v63 = vpop.f32.mrf.mxu0 }
  0xf4   : > { %v1937_v0 = vpop.f32.mrf.mxu1 }
  0xf5   : > { %v1939_v1 = vpop.f32.mrf.mxu0 }
  0xf6   : > { %v1941_v2 = vpop.f32.mrf.mxu1 }
  0xf7   : > { %v1943_v3 = vpop.f32.mrf.mxu0 }
  0xf8   : > { %v1945_v4 = vpop.f32.mrf.mxu1 }
  0xf9   : > { %v1947_v5 = vpop.f32.mrf.mxu0 }
  0xfa   : > { %v1949_v6 = vpop.f32.mrf.mxu1 }
  0xfb   : > { %v1503_v7 = vpop.f32.mrf.mxu0 }
  0xfc   : > { %v1469_v8 = vpop.f32.mrf.mxu1 }
  0xfd   : > { %v595_v9 = vadd.f32 %v1469_v8, %v1435_v39  ;;  %v918_v10 = vpop.f32.mrf.mxu0 }
  0xfe   : > { %v586_v12 = vpop.f32.mrf.mxu1 }
  0xff   : > { %v1047_v13 = vadd.f32 %v1503_v7, %v595_v9  ;;  %v587_v14 = vadd.f32 %v586_v12, %v409_v41  ;;  %v1504_v15 = vpop.f32.mrf.mxu0 }
 0x100   : > { %v1470_v16 = vpop.f32.mrf.mxu1 }
 0x101   : > { %v1086_v17 = vadd.f32 %v1955_v11, %v1047_v13  ;;  %v1045_v18 = vadd.f32 %v918_v10, %v587_v14  ;;  %v598_v19 = vadd.f32 %v1470_v16, %v1436_v43  ;;  %v921_v20 = vpop.f32.mrf.mxu0 }
 0x102   : > { %v589_v21 = vpop.f32.mrf.mxu1 }
 0x103   : > { %v1118_v22 = vmax.f32 %v1086_v17, 0.0  ;;  %v1084_v23 = vadd.f32 %v1955_v11, %v1045_v18  ;;  %v1048_v24 = vadd.f32 %v1504_v15, %v598_v19  ;;  %v590_v25 = vadd.f32 %v589_v21, %v412_v45  ;;  %v1507_v26 = vpop.f32.mrf.mxu0 }
 0x104   : > { %v1473_v27 = vpop.f32.mrf.mxu1 }
 0x105   : > { %1150 = vst [vmem:[%s1961_s21 + $0x10] sm:$0xff] %v1118_v22  ;;  %v1116_v28 = vmax.f32 %v1084_v23, 0.0  ;;  %v1087_v29 = vadd.f32 %v1955_v11, %v1048_v24  ;;  %v1046_v30 = vadd.f32 %v921_v20, %v590_v25  ;;  %v611_v31 = vadd.f32 %v1473_v27, %v1439_v47  ;;  %v934_v32 = vpop.f32.mrf.mxu0 }
 0x106   : > { %v602_v33 = vpop.f32.mrf.mxu1 }
 0x107   : > { %1148 = vst [vmem:[%s1961_s21] sm:$0xff] %v1116_v28  ;;  %v1119_v34 = vmax.f32 %v1087_v29, 0.0  ;;  %v1085_v35 = vadd.f32 %v1955_v11, %v1046_v30  ;;  %v1051_v36 = vadd.f32 %v1507_v26, %v611_v31  ;;  %v603_v37 = vadd.f32 %v602_v33, %v425_v49  ;;  %v1508_v38 = vpop.f32.mrf.mxu0 }
 0x108   : > { %v1474_v39 = vpop.f32.mrf.mxu1 }
 0x109   : > { %1151 = vst [vmem:[%s1961_s21 + $0x18] sm:$0xff] %v1119_v34  ;;  %v1117_v41 = vmax.f32 %v1085_v35, 0.0  ;;  %v1090_v43 = vadd.f32 %v1955_v11, %v1051_v36  ;;  %v1049_v45 = vadd.f32 %v934_v32, %v603_v37  ;;  %v614_v7 = vadd.f32 %v1474_v39, %v1440_v51  ;;  %v937_v8 = vpop.f32.mrf.mxu0 }
 0x10a   : > { %v605_v47 = vpop.f32.mrf.mxu1 }
 0x10b   : > { %1149 = vst [vmem:[%s1961_s21 + $0x8] sm:$0xff] %v1117_v41  ;;  %v1122_v9 = vmax.f32 %v1090_v43, 0.0  ;;  %v1088_v10 = vadd.f32 %v1955_v11, %v1049_v45  ;;  %v1052_v12 = vadd.f32 %v1508_v38, %v614_v7  ;;  %v606_v13 = vadd.f32 %v605_v47, %v1915_v53  ;;  %v1511_v49 = vpop.f32.mrf.mxu0 }
 0x10c   : > { %v1477_v14 = vpop.f32.mrf.mxu1 }
 0x10d   : > { %1154 = vst [vmem:[%s1961_s21 + $0x30] sm:$0xff] %v1122_v9  ;;  %v1120_v15 = vmax.f32 %v1088_v10, 0.0  ;;  %v1091_v16 = vadd.f32 %v1955_v11, %v1052_v12  ;;  %v1050_v17 = vadd.f32 %v937_v8, %v606_v13  ;;  %v627_v51 = vadd.f32 %v1477_v14, %v1919_v55  ;;  %v950_v18 = vpop.f32.mrf.mxu0 }
 0x10e   : > { %v618_v19 = vpop.f32.mrf.mxu1 }
 0x10f   : > { %1152 = vst [vmem:[%s1961_s21 + $0x20] sm:$0xff] %v1120_v15  ;;  %v1123_v20 = vmax.f32 %v1091_v16, 0.0  ;;  %v1089_v21 = vadd.f32 %v1955_v11, %v1050_v17  ;;  %v1055_v22 = vadd.f32 %v1511_v49, %v627_v51  ;;  %v619_v53 = vadd.f32 %v618_v19, %v1923_v57  ;;  %v1512_v23 = vpop.f32.mrf.mxu0 }
 0x110   : > { %v1478_v24 = vpop.f32.mrf.mxu1 }
 0x111   : > { %1155 = vst [vmem:[%s1961_s21 + $0x38] sm:$0xff] %v1123_v20  ;;  %v1121_v25 = vmax.f32 %v1089_v21, 0.0  ;;  %v1094_v26 = vadd.f32 %v1955_v11, %v1055_v22  ;;  %v1053_v27 = vadd.f32 %v950_v18, %v619_v53  ;;  %v630_v55 = vadd.f32 %v1478_v24, %v1927_v59  ;;  %v953_v28 = vpop.f32.mrf.mxu0 }
 0x112   : > { %v621_v29 = vpop.f32.mrf.mxu1 }
 0x113   : > { %1153 = vst [vmem:[%s1961_s21 + $0x28] sm:$0xff] %v1121_v25  ;;  %v1126_v30 = vmax.f32 %v1094_v26, 0.0  ;;  %v1092_v31 = vadd.f32 %v1955_v11, %v1053_v27  ;;  %v1056_v32 = vadd.f32 %v1512_v23, %v630_v55  ;;  %v622_v57 = vadd.f32 %v621_v29, %v1931_v61  ;;  %v1515_v33 = vpop.f32.mrf.mxu0 }
 0x114   : > { %v1481_v34 = vpop.f32.mrf.mxu1 }
 0x115   : > { %1158 = vst [vmem:[%s1961_s21 + $0x50] sm:$0xff] %v1126_v30  ;;  %v1124_v35 = vmax.f32 %v1092_v31, 0.0  ;;  %v1095_v36 = vadd.f32 %v1955_v11, %v1056_v32  ;;  %v1054_v37 = vadd.f32 %v953_v28, %v622_v57  ;;  %v643_v59 = vadd.f32 %v1481_v34, %v1935_v63  ;;  %v966_v38 = vpop.f32.mrf.mxu0 }
 0x116   : > { %v634_v39 = vpop.f32.mrf.mxu1 }
 0x117   : > { %1156 = vst [vmem:[%s1961_s21 + $0x40] sm:$0xff] %v1124_v35  ;;  %v1127_v41 = vmax.f32 %v1095_v36, 0.0  ;;  %v1093_v43 = vadd.f32 %v1955_v11, %v1054_v37  ;;  %v1059_v45 = vadd.f32 %v1515_v33, %v643_v59  ;;  %v635_v61 = vadd.f32 %v634_v39, %v1939_v1  ;;  %v1516_v7 = vpop.f32.mrf.mxu0 }
 0x118   : > { %v1482_v8 = vpop.f32.mrf.mxu1 }
 0x119   : > { %1159 = vst [vmem:[%s1961_s21 + $0x58] sm:$0xff] %v1127_v41  ;;  %v1125_v47 = vmax.f32 %v1093_v43, 0.0  ;;  %v1098_v9 = vadd.f32 %v1955_v11, %v1059_v45  ;;  %v1057_v10 = vadd.f32 %v966_v38, %v635_v61  ;;  %v646_v63 = vadd.f32 %v1482_v8, %v1943_v3  ;;  %v969_v12 = vpop.f32.mrf.mxu0 }
 0x11a   : > { %v637_v13 = vpop.f32.mrf.mxu1 }
 0x11b   : > { %1157 = vst [vmem:[%s1961_s21 + $0x48] sm:$0xff] %v1125_v47  ;;  %v1130_v49 = vmax.f32 %v1098_v9, 0.0  ;;  %v1096_v14 = vadd.f32 %v1955_v11, %v1057_v10  ;;  %v1060_v15 = vadd.f32 %v1516_v7, %v646_v63  ;;  %v638_v1 = vadd.f32 %v637_v13, %v1947_v5  ;;  %v1519_v16 = vpop.f32.mrf.mxu0 }
 0x11c   : > { %v1485_v17 = vpop.f32.mrf.mxu1 }
 0x11d   : > { %1162 = vst [vmem:[%s1961_s21 + $0x70] sm:$0xff] %v1130_v49  ;;  %v1128_v51 = vmax.f32 %v1096_v14, 0.0  ;;  %v1099_v18 = vadd.f32 %v1955_v11, %v1060_v15  ;;  %v1058_v19 = vadd.f32 %v969_v12, %v638_v1  ;;  %v659_v3 = vadd.f32 %v1485_v17, %v1901_v40  ;;  %v982_v20 = vpop.f32.mrf.mxu0 }
 0x11e   : > { %v650_v21 = vpop.f32.mrf.mxu1 }
 0x11f   : > { %1160 = vst [vmem:[%s1961_s21 + $0x60] sm:$0xff] %v1128_v51  ;;  %v1131_v22 = vmax.f32 %v1099_v18, 0.0  ;;  %v1097_v53 = vadd.f32 %v1955_v11, %v1058_v19  ;;  %v1063_v23 = vadd.f32 %v1519_v16, %v659_v3  ;;  %v651_v5 = vadd.f32 %v650_v21, %v1903_v42  ;;  %v1520_v24 = vpop.f32.mrf.mxu0 }
 0x120   : > { %v1486_v25 = vpop.f32.mrf.mxu1 }
 0x121   : > { %1163 = vst [vmem:[%s1961_s21 + $0x78] sm:$0xff] %v1131_v22  ;;  %v1129_v26 = vmax.f32 %v1097_v53, 0.0  ;;  %v1102_v27 = vadd.f32 %v1955_v11, %v1063_v23  ;;  %v1061_v55 = vadd.f32 %v982_v20, %v651_v5  ;;  %v662_v40 = vadd.f32 %v1486_v25, %v1905_v44  ;;  %v985_v28 = vpop.f32.mrf.mxu0 }
 0x122   : > { %v653_v29 = vpop.f32.mrf.mxu1 }
 0x123   : > { %1161 = vst [vmem:[%s1961_s21 + $0x68] sm:$0xff] %v1129_v26  ;;  %v1134_v30 = vmax.f32 %v1102_v27, 0.0  ;;  %v1100_v31 = vadd.f32 %v1955_v11, %v1061_v55  ;;  %v1064_v32 = vadd.f32 %v1520_v24, %v662_v40  ;;  %v654_v42 = vadd.f32 %v653_v29, %v1907_v46  ;;  %v1523_v57 = vpop.f32.mrf.mxu0 }
 0x124   : > { %v1489_v33 = vpop.f32.mrf.mxu1 }
 0x125   : > { %1166 = vst [vmem:[%s1961_s21 + $0x90] sm:$0xff] %v1134_v30  ;;  %v1132_v34 = vmax.f32 %v1100_v31, 0.0  ;;  %v1103_v35 = vadd.f32 %v1955_v11, %v1064_v32  ;;  %v1062_v36 = vadd.f32 %v985_v28, %v654_v42  ;;  %v675_v44 = vadd.f32 %v1489_v33, %v1909_v48  ;;  %v998_v37 = vpop.f32.mrf.mxu0 }
 0x126   : > { %v666_v59 = vpop.f32.mrf.mxu1 }
 0x127   : > { %1164 = vst [vmem:[%s1961_s21 + $0x80] sm:$0xff] %v1132_v34  ;;  %v1135_v38 = vmax.f32 %v1103_v35, 0.0  ;;  %v1101_v39 = vadd.f32 %v1955_v11, %v1062_v36  ;;  %v1067_v41 = vadd.f32 %v1523_v57, %v675_v44  ;;  %v667_v46 = vadd.f32 %v666_v59, %v1911_v50  ;;  %v1524_v43 = vpop.f32.mrf.mxu0 }
 0x128   : > { %v1490_v45 = vpop.f32.mrf.mxu1 }
 0x129   : > { %1167 = vst [vmem:[%s1961_s21 + $0x98] sm:$0xff] %v1135_v38  ;;  %v1133_v61 = vmax.f32 %v1101_v39, 0.0  ;;  %v1106_v7 = vadd.f32 %v1955_v11, %v1067_v41  ;;  %v1065_v8 = vadd.f32 %v998_v37, %v667_v46  ;;  %v678_v48 = vadd.f32 %v1490_v45, %v1913_v52  ;;  %v1001_v47 = vpop.f32.mrf.mxu0 }
 0x12a   : > { %v669_v9 = vpop.f32.mrf.mxu1 }
 0x12b   : > { %1165 = vst [vmem:[%s1961_s21 + $0x88] sm:$0xff] %v1133_v61  ;;  %v1138_v10 = vmax.f32 %v1106_v7, 0.0  ;;  %v1104_v63 = vadd.f32 %v1955_v11, %v1065_v8  ;;  %v1068_v12 = vadd.f32 %v1524_v43, %v678_v48  ;;  %v670_v50 = vadd.f32 %v669_v9, %v1917_v54  ;;  %v1527_v13 = vpop.f32.mrf.mxu0 }
 0x12c   : > { %v1493_v49 = vpop.f32.mrf.mxu1 }
 0x12d   : > { %1170 = vst [vmem:[%s1961_s21 + $0xb0] sm:$0xff] %v1138_v10  ;;  %v1136_v14 = vmax.f32 %v1104_v63, 0.0  ;;  %v1107_v15 = vadd.f32 %v1955_v11, %v1068_v12  ;;  %v1066_v1 = vadd.f32 %v1001_v47, %v670_v50  ;;  %v691_v52 = vadd.f32 %v1493_v49, %v1921_v56  ;;  %v1014_v16 = vpop.f32.mrf.mxu0 }
 0x12e   : > { %v682_v17 = vpop.f32.mrf.mxu1 }
 0x12f   : > { %1168 = vst [vmem:[%s1961_s21 + $0xa0] sm:$0xff] %v1136_v14  ;;  %v1139_v51 = vmax.f32 %v1107_v15, 0.0  ;;  %v1105_v18 = vadd.f32 %v1955_v11, %v1066_v1  ;;  %v1071_v19 = vadd.f32 %v1527_v13, %v691_v52  ;;  %v683_v54 = vadd.f32 %v682_v17, %v1925_v58  ;;  %v1528_v3 = vpop.f32.mrf.mxu0 }
 0x130   : > { %v1494_v20 = vpop.f32.mrf.mxu1 }
 0x131   : > { %1171 = vst [vmem:[%s1961_s21 + $0xb8] sm:$0xff] %v1139_v51  ;;  %v1137_v21 = vmax.f32 %v1105_v18, 0.0  ;;  %v1110_v22 = vadd.f32 %v1955_v11, %v1071_v19  ;;  %v1069_v53 = vadd.f32 %v1014_v16, %v683_v54  ;;  %v694_v56 = vadd.f32 %v1494_v20, %v1929_v60  ;;  %v1017_v23 = vpop.f32.mrf.mxu0 }
 0x132   : > { %v685_v5 = vpop.f32.mrf.mxu1 }
 0x133   : > { %1169 = vst [vmem:[%s1961_s21 + $0xa8] sm:$0xff] %v1137_v21  ;;  %v1142_v24 = vmax.f32 %v1110_v22, 0.0  ;;  %v1108_v25 = vadd.f32 %v1955_v11, %v1069_v53  ;;  %v1072_v26 = vadd.f32 %v1528_v3, %v694_v56  ;;  %v686_v58 = vadd.f32 %v685_v5, %v1933_v62  ;;  %v1531_v27 = vpop.f32.mrf.mxu0 }
 0x134   : > { %v1497_v55 = vpop.f32.mrf.mxu1 }
 0x135   : > { %1174 = vst [vmem:[%s1961_s21 + $0xd0] sm:$0xff] %v1142_v24  ;;  %v1140_v40 = vmax.f32 %v1108_v25, 0.0  ;;  %v1111_v28 = vadd.f32 %v1955_v11, %v1072_v26  ;;  %v1070_v29 = vadd.f32 %v1017_v23, %v686_v58  ;;  %v707_v60 = vadd.f32 %v1497_v55, %v1937_v0  ;;  %v1030_v30 = vpop.f32.mrf.mxu0 }
 0x136   : > { %v698_v31 = vpop.f32.mrf.mxu1 }
 0x137   : > { %1172 = vst [vmem:[%s1961_s21 + $0xc0] sm:$0xff] %v1140_v40  ;;  %v1143_v32 = vmax.f32 %v1111_v28, 0.0  ;;  %v1109_v42 = vadd.f32 %v1955_v11, %v1070_v29  ;;  %v1075_v57 = vadd.f32 %v1531_v27, %v707_v60  ;;  %v699_v62 = vadd.f32 %v698_v31, %v1941_v2  ;;  %v1532_v34 = vpop.f32.mrf.mxu0 }
 0x138   : > { %v1498_v33 = vpop.f32.mrf.mxu1 }
 0x139   : > { %1175 = vst [vmem:[%s1961_s21 + $0xd8] sm:$0xff] %v1143_v32  ;;  %v1141_v35 = vmax.f32 %v1109_v42, 0.0  ;;  %v1114_v36 = vadd.f32 %v1955_v11, %v1075_v57  ;;  %v1073_v0 = vadd.f32 %v1030_v30, %v699_v62  ;;  %v710_v44 = vadd.f32 %v1498_v33, %v1945_v4  ;;  %v1033_v41 = vpop.f32.mrf.mxu0 }
 0x13a   : > { %v701_v37 = vpop.f32.mrf.mxu1 }
 0x13b   : > { %1173 = vst [vmem:[%s1961_s21 + $0xc8] sm:$0xff] %v1141_v35  ;;  %v1146_v59 = vmax.f32 %v1114_v36, 0.0  ;;  %v1112_v38 = vadd.f32 %v1955_v11, %v1073_v0  ;;  %v1076_v39 = vadd.f32 %v1532_v34, %v710_v44  ;;  %v702_v2 = vadd.f32 %v701_v37, %v1949_v6 }
 0x13d   : > { %1178 = vst [vmem:[%s1961_s21 + $0xf0] sm:$0xff] %v1146_v59  ;;  %v1144_v46 = vmax.f32 %v1112_v38, 0.0  ;;  %v1115_v43 = vadd.f32 %v1955_v11, %v1076_v39  ;;  %v1074_v45 = vadd.f32 %v1033_v41, %v702_v2 }
 0x13f   : > { %1176 = vst [vmem:[%s1961_s21 + $0xe0] sm:$0xff] %v1144_v46  ;;  %v1147_v4 = vmax.f32 %v1115_v43, 0.0  ;;  %v1113_v61 = vadd.f32 %v1955_v11, %v1074_v45 }
 0x141   : > { %1179 = vst [vmem:[%s1961_s21 + $0xf8] sm:$0xff] %v1147_v4  ;;  %v1145_v6 = vmax.f32 %v1113_v61, 0.0 }
 0x143   : > { %1177 = vst [vmem:[%s1961_s21 + $0xe8] sm:$0xff] %v1145_v6 }
 0x144   : > { %1646 = shalt.err (!%p1643_p5)
}
 0x145   : > { %s1647_s7 = scalar_lea.hbm %s2053_s29, 4096  ;;  %s1651_s10 = scalar_lea.hbm %s2109_s3, 8192 }
 0x146   : > { %p1648_p6 = scmp.ne.s32.totalorder %s2053_s29, %s1647_s7  ;;  %p1652_p10 = scmp.lt.s32.totalorder %s2053_s29, %s2109_s3 }
 0x147   : > { %p1653_p11 = scmp.lt.s32.totalorder %s1651_s10, %s1647_s7 }
 0x148   : > { %p1649_p7 = pnand %p1648_p6, %p1774_p4 }
 0x149   : > { %p1654_p12 = por %p1653_p11, %p1652_p10 }
 0x14a   : > { %p1650_p9 = pneg %p1649_p7 }
 0x14c   : > { %p1655_p13 = pnand %p1654_p12, %p1650_p9 }
 0x14e   : > { %1658 = shalt.err (!%p1655_p13)
}
 0x14f   : > { %s1712_s19 = smov 128   ;;  %s1713_s21 = smov 8  }
 0x150   : > { %1540 = dma.vmem_to_hbm [thread:$0]  (%p1774_p4), %s2055_s26, 4096, %s2053_s29, %s2061_s15, %s1712_s19, %s1712_s19, %s1713_s21  }
 0x151 PF: > { %p1546_p0 = scmp.ge.s32.totalorder %s1709_s17, 2  ;;  %s1211_s23 = sand.u32 1, %s1689_s12  }
 0x152   : > { %s1212_s27 = scalar_lea.sflag [#allocation3], %s1211_s23 }
 0x153   : > { %p1543_p1 = pnand %p1546_p0, %p1781_p8 }
 0x155   : > { %p1544_p2 = pneg %p1543_p1 }
 0x157   : > { %1684 = dma.done.wait (%p1544_p2), %s1212_s27, 4096  }
 0x158   : > { %1686 = vsyncadd (%p1544_p2), %s1212_s27, 4294963200  ;;  %s16_s17 = sadd.s32 1, %s1709_s17   ;;  %s2112_s12 = smov %s1693_s13 }
 0x159   : > { %p13_p3 = scmp.ge.s32.totalorder %s16_s17, 4   ;;  %s2113_s13 = smov %s1697_s14 }
 0x15a   : > { %s2114_s14 = smov %s1787_s25  ;;  %s2115_s15 = smov %s1705_s16 }
 0x15b   : > { %s2116_s16 = smov %s2118_s20  ;;  %15 = sbr.rel (!%p13_p3) target bundleno = 4 (0x4), region = 69 }
 0x160   :  { %1217 = vsyncpa [#allocation3], 1 }
 0x161   :  { %1219 = vsyncpa [#allocation3 + $0x1], 1 }

</bundles_post_ra>
